<compile_context>
chip_gen: v5e
topology: v5e:2x2
jax: 0.10.0
libtpu: 0.0.40
codegen_flags: <defaults>
</compile_context>

<pallas_src>
import numpy as np
import jax
import jax.numpy as jnp
from jax.experimental import pallas as pl
from jax.experimental.pallas import tpu as pltpu


def _dma_copy_kernel(x_hbm_ref, o_hbm_ref, sem):
    # One whole-array HBM->HBM DMA: no VMEM staging, no grid steps.
    cp = pltpu.make_async_copy(x_hbm_ref, o_hbm_ref, sem)
    cp.start()
    cp.wait()


def _dma_identity_copy(ts: jax.Array) -> jax.Array:
    """Materialize a bit-exact copy of `ts` with a single HBM->HBM DMA."""
    return pl.pallas_call(
        _dma_copy_kernel,
        out_shape=jax.ShapeDtypeStruct(ts.shape, ts.dtype),
        in_specs=[pl.BlockSpec(memory_space=pl.ANY)],
        out_specs=pl.BlockSpec(memory_space=pl.ANY),
        scratch_shapes=[pltpu.SemaphoreType.DMA],
    )(ts)


def seq_embedder(ts: jax.Array, *, materialize: bool = False) -> jax.Array:
    """Pallas-backed SeqEmbedder.forward equivalent (pass-through of `ts`)."""
    # TODO(synk): reference SeqEmbedder.forward body is `pass` (returns None);
    # there is no compute to port, so this is a faithful pass-through of `ts`.
    if not materialize:
        # Fastest possible "implementation" of an identity: no kernel launch,
        # no HBM traffic.
        return ts
    # Caller explicitly requested a fresh buffer: single HBM->HBM DMA copy.
    return _dma_identity_copy(ts)


if __name__ == "__main__":
    key = jax.random.PRNGKey(0)
    k0, k1 = jax.random.split(key)

    # Shapes consistent with the module's forward signature: small batches of
    # per-frame timestamps (batch=2, seq=8) and (batch=4, seq=32).
    ts_small = jax.random.uniform(k0, (2, 8), dtype=jnp.float32)
    ts_seq = jax.random.uniform(k1, (4, 32), dtype=jnp.float32)

    for ts in (ts_small, ts_seq):
        ref = np.asarray(ts)

        # Fast path: pure pass-through (no kernel launched).
        out_fast = jax.block_until_ready(seq_embedder(ts))
        assert out_fast.shape == ts.shape and out_fast.dtype == ts.dtype
        np.testing.assert_array_equal(np.asarray(out_fast), ref)

        # Materialized path: single gridless HBM->HBM DMA Pallas kernel.
        out_copy = jax.block_until_ready(seq_embedder(ts, materialize=True))
        assert out_copy.shape == ts.shape and out_copy.dtype == ts.dtype
        np.testing.assert_array_equal(np.asarray(out_copy), ref)

    print("KERNEL_OK")
</pallas_src>

<mosaic_0001>
module attributes {stable_mosaic.version = 11 : i64} {
  func.func @_dma_copy_kernel(%arg0: memref<2x8xf32, #tpu.memory_space<any>>, %arg1: memref<2x8xf32, #tpu.memory_space<any>>, %arg2: memref<!tpu.dma_semaphore, #tpu.memory_space<semaphore_mem>>) attributes {dimension_semantics = [], scalar_prefetch = 0 : i64, scratch_operands = 1 : i64, tpu.core_type = #tpu.core_type<tc>} {
    tpu.enqueue_dma source(%arg0 : memref<2x8xf32, #tpu.memory_space<any>>) target(%arg1 : memref<2x8xf32, #tpu.memory_space<any>>) target_semaphore(%arg2 : memref<!tpu.dma_semaphore, #tpu.memory_space<semaphore_mem>>)
    tpu.wait_dma2 semaphore(%arg2 : memref<!tpu.dma_semaphore, #tpu.memory_space<semaphore_mem>>) src(%arg0 : memref<2x8xf32, #tpu.memory_space<any>>) dst(%arg1 : memref<2x8xf32, #tpu.memory_space<any>>)
    return
  }
}

</mosaic_0001>

<bundles_post_ra>
// kernel: tpu_custom_call.1
= control target key start
LH: loop header
LB: loop body
LE: loop exit
PB: predicated region body
PF: predicated region fallthrough
CT: control target
= control target key end

     0   :  { %s32_s12 = smov [#allocation2]   ;;  %s33_s13 = smov [#allocation3]   ;;  %s51_s0 = inlined_call_operand.hbm [shape: f32[2,8], index: 0, kind: input, shape index: {}]   ;;  %s52_s1 = inlined_call_operand.hbm [shape: f32[2,8], index: 1, kind: output, shape index: {}]  }
   0x1   :  { %s10_s8 = sshll.u32 %s51_s0, 4  ;;  %s12_s11 = sshll.u32 %s52_s1, 4  ;;  %s11_s8 = int_to_ptr.hbm [resolvable:$true] %s10_s8  ;;  %s13_s11 = int_to_ptr.hbm [resolvable:$true] %s12_s11 }
   0x2   :  { %s34_s14 = smov 0  }
   0x3   :  { %16 = dma.general %s11_s8, 32, %s13_s11, %s32_s12, %s33_s13, [#allocation4], %s34_s14, 0  }
   0x4   :  { %30 = dma.done.wait [#allocation2], 32 }
   0x5   :  { %31 = vsyncadd [#allocation2], 4294967264 }
   0x6   :  { %20 = vsyncmov [#allocation2] }
   0x9   :  { %s21_s15 = vpop.sfrf %20 }
   0xa   :  { %p26_p0 = scmp.ne.s32.totalorder %s21_s15, 0 }
   0xc   :  { %25 = shalt.err (%p26_p0)  }

</bundles_post_ra>
